<compile_context>
chip_gen: v7x
topology: tpu7x:2x2x1
jax: 0.10.0
libtpu: 0.0.40
codegen_flags: <defaults>
</compile_context>

<pallas_src>
import math

import jax
import jax.numpy as jnp
from jax import lax
from jax.experimental import pallas as pl
from jax.experimental.pallas import tpu as pltpu


_SQRT_HALF = 1.0 / math.sqrt(2.0)
_EPS = 1e-12  # matches nn.LayerNorm(..., eps=1e-12) in the PyTorch module


def _mlp_ln_trans_kernel(x_ref, g0_ref, b0_ref, w1_ref, b1_ref,
                         g1_ref, be1_ref, w2_ref, b2_ref, o_ref):
    x = x_ref[...].astype(jnp.float32)                       # (tm, D)

    # ---- LayerNorm over input_dim (self.ln), eps=1e-12 ----
    mu = jnp.mean(x, axis=-1, keepdims=True)
    var = jnp.mean(jnp.square(x - mu), axis=-1, keepdims=True)
    xn = (x - mu) * lax.rsqrt(var + _EPS)
    xn = xn * g0_ref[...] + b0_ref[...]

    # ---- input_projection: Linear(input_dim -> embed_dim) (MXU, f32 accumulate) ----
    h = jnp.dot(xn.astype(w1_ref.dtype), w1_ref[...],
                preferred_element_type=jnp.float32) + b1_ref[...]

    # ---- GELU (exact erf; matches nn.GELU() default) ----
    h = 0.5 * h * (1.0 + lax.erf(h * _SQRT_HALF))

    # ---- LayerNorm over embed_dim (self.ln1), eps=1e-12 ----
    mu1 = jnp.mean(h, axis=-1, keepdims=True)
    var1 = jnp.mean(jnp.square(h - mu1), axis=-1, keepdims=True)
    hn = (h - mu1) * lax.rsqrt(var1 + _EPS)
    hn = hn * g1_ref[...] + be1_ref[...]

    # Dropout: eval-mode identity.
    # TODO(synk): training-mode dropout would use pltpu.prng_seed / prng_random_bits.

    # ---- output_projection: Linear(embed_dim -> output_dim) + residual (f32) ----
    out = jnp.dot(hn.astype(w2_ref.dtype), w2_ref[...],
                  preferred_element_type=jnp.float32) + b2_ref[...]
    o_ref[...] = (out + x).astype(o_ref.dtype)


def _round_up(n, m):
    return (n + m - 1) // m * m


def mlp_ln_trans(x, params, *, tm=256, use_bf16_matmul=True):
    """x: (B, S, input_dim). Returns (B, S, output_dim), output_dim == input_dim."""
    g0, b0, w1, b1, g1, be1, w2, b2 = params
    B, S, D = x.shape
    E = w1.shape[1]
    assert w2.shape[1] == D, "residual add requires output_dim == input_dim"

    N = B * S
    x2 = x.reshape(N, D)

    # Effective row tile: clamp to the (8-aligned) row count, pad rows up to a multiple.
    tm_eff = min(tm, _round_up(N, 8))
    N_pad = _round_up(N, tm_eff)
    if N_pad != N:
        x2 = jnp.pad(x2, ((0, N_pad - N), (0, 0)))

    # bf16 MXU operands (roughly 2x MXU throughput, half the weight VMEM/HBM bytes).
    w_dtype = jnp.bfloat16 if use_bf16_matmul else w1.dtype
    w1_ = w1.astype(w_dtype)
    w2_ = w2.astype(w_dtype)

    # 1-D params presented as (1, feat) so they sit lane-major in VMEM (kept f32).
    g0_ = g0.reshape(1, D).astype(jnp.float32)
    b0_ = b0.reshape(1, D).astype(jnp.float32)
    b1_ = b1.reshape(1, E).astype(jnp.float32)
    g1_ = g1.reshape(1, E).astype(jnp.float32)
    be1_ = be1.reshape(1, E).astype(jnp.float32)
    b2_ = b2.reshape(1, D).astype(jnp.float32)

    w_bytes = jnp.dtype(w_dtype).itemsize
    x_bytes = jnp.dtype(x.dtype).itemsize

    # VMEM estimate: single-buffered weights + small params + double-buffered x/out
    # tiles + fused f32 activation slabs; set the scoped limit with 2x headroom
    # (capped below typical physical VMEM; re-derive tm for very large D*E on v7x).
    vmem_est = (2 * D * E * w_bytes
                + (3 * D + 3 * E) * 4
                + 2 * 2 * tm_eff * D * x_bytes
                + 4 * tm_eff * max(D, E) * 4)
    vmem_limit = int(min(100 * 1024 * 1024, max(32 * 1024 * 1024, 2 * vmem_est)))

    cost = pl.CostEstimate(
        flops=4 * N_pad * D * E,                      # two matmuls
        transcendentals=N_pad * E,                    # erf
        bytes_accessed=(2 * N_pad * D * x_bytes       # x in + out
                        + 2 * D * E * w_bytes         # both weights
                        + (3 * D + 3 * E) * 4),       # 1-row params
    )

    have_buffered = hasattr(pl, "Buffered")

    def build(single_buffer_consts):
        if single_buffer_consts and have_buffered:
            # Grid-invariant operands: single VMEM buffer, loaded once (block index
            # never changes, so no re-DMA; Buffered(1) drops the second buffer).
            def const_spec(shape):
                return pl.BlockSpec(shape, lambda i: (0, 0),
                                    pipeline_mode=pl.Buffered(1))
        else:
            def const_spec(shape):
                return pl.BlockSpec(shape, lambda i: (0, 0))

        return pl.pallas_call(
            _mlp_ln_trans_kernel,
            out_shape=jax.ShapeDtypeStruct((N_pad, D), x.dtype),
            grid_spec=pltpu.PrefetchScalarGridSpec(
                num_scalar_prefetch=0,
                grid=(N_pad // tm_eff,),
                in_specs=[
                    pl.BlockSpec((tm_eff, D), lambda i: (i, 0)),  # x rows
                    const_spec((1, D)),       # ln gamma
                    const_spec((1, D)),       # ln beta
                    const_spec((D, E)),       # W1
                    const_spec((1, E)),       # b1
                    const_spec((1, E)),       # ln1 gamma
                    const_spec((1, E)),       # ln1 beta
                    const_spec((E, D)),       # W2
                    const_spec((1, D)),       # b2
                ],
                out_specs=pl.BlockSpec((tm_eff, D), lambda i: (i, 0)),
            ),
            compiler_params=pltpu.CompilerParams(
                dimension_semantics=("parallel",),
                vmem_limit_bytes=vmem_limit),
            cost_estimate=cost,
        )

    args = (x2, g0_, b0_, w1_, b1_, g1_, be1_, w2_, b2_)
    try:
        out2 = build(True)(*args)
    except Exception:
        # Fallback: identical semantics with default (double) buffering of constants.
        out2 = build(False)(*args)

    if N_pad != N:
        out2 = out2[:N]
    return out2.reshape(B, S, D)


def init_params(key, input_dim, embed_dim, output_dim):
    """Deterministic init mimicking PyTorch defaults (LayerNorm: ones/zeros,
    Linear: U(-1/sqrt(fan_in), 1/sqrt(fan_in)))."""
    k1, k2, k3, k4 = jax.random.split(key, 4)
    g0 = jnp.ones((input_dim,), jnp.float32)
    b0 = jnp.zeros((input_dim,), jnp.float32)
    lim1 = 1.0 / math.sqrt(input_dim)
    w1 = jax.random.uniform(k1, (input_dim, embed_dim), jnp.float32, -lim1, lim1)
    b1 = jax.random.uniform(k2, (embed_dim,), jnp.float32, -lim1, lim1)
    g1 = jnp.ones((embed_dim,), jnp.float32)
    be1 = jnp.zeros((embed_dim,), jnp.float32)
    lim2 = 1.0 / math.sqrt(embed_dim)
    w2 = jax.random.uniform(k3, (embed_dim, output_dim), jnp.float32, -lim2, lim2)
    b2 = jax.random.uniform(k4, (output_dim,), jnp.float32, -lim2, lim2)
    return (g0, b0, w1, b1, g1, be1, w2, b2)


def reference(x, params, matmul_dtype=jnp.float32):
    """Plain-JAX reference of the forward pass (eval mode).

    matmul_dtype lets us mirror the kernel's bf16 MXU operands exactly while
    keeping LayerNorm / GELU / residual in f32 (like the kernel does)."""
    g0, b0, w1, b1, g1, be1, w2, b2 = params
    origin = x
    mu = jnp.mean(x, -1, keepdims=True)
    var = jnp.mean(jnp.square(x - mu), -1, keepdims=True)
    h = (x - mu) * lax.rsqrt(var + _EPS) * g0 + b0
    h = jnp.dot(h.astype(matmul_dtype), w1.astype(matmul_dtype),
                preferred_element_type=jnp.float32) + b1
    h = 0.5 * h * (1.0 + lax.erf(h * _SQRT_HALF))
    mu1 = jnp.mean(h, -1, keepdims=True)
    var1 = jnp.mean(jnp.square(h - mu1), -1, keepdims=True)
    h = (h - mu1) * lax.rsqrt(var1 + _EPS) * g1 + be1
    return jnp.dot(h.astype(matmul_dtype), w2.astype(matmul_dtype),
                   preferred_element_type=jnp.float32) + b2 + origin


if __name__ == "__main__":
    # Small but lane-friendly shapes (feature dims multiples of 128 -> unmasked stores).
    B, S = 2, 8
    input_dim, embed_dim, output_dim = 128, 256, 128

    key = jax.random.PRNGKey(0)
    kx, kp = jax.random.split(key)
    x = jax.random.normal(kx, (B, S, input_dim), jnp.float32)
    params = init_params(kp, input_dim, embed_dim, output_dim)

    out = mlp_ln_trans(x, params, tm=256, use_bf16_matmul=True)
    out = jax.block_until_ready(out)
    assert out.shape == (B, S, output_dim)

    # Exact check against a reference using the same bf16 MXU operands / f32 accumulation.
    ref_bf16 = reference(x, params, matmul_dtype=jnp.bfloat16)
    assert jnp.allclose(out, ref_bf16, atol=2e-3, rtol=2e-3), \
        f"max abs err vs bf16-matched ref {jnp.max(jnp.abs(out - ref_bf16))}"

    # Semantic sanity check against the pure-f32 math of the PyTorch module.
    ref_f32 = reference(x, params, matmul_dtype=jnp.float32)
    assert jnp.allclose(out, ref_f32, atol=5e-2, rtol=5e-2), \
        f"max abs err vs f32 ref {jnp.max(jnp.abs(out - ref_f32))}"

    print("KERNEL_OK")
</pallas_src>

<mosaic_0001>
module attributes {stable_mosaic.version = 11 : i64} {
  func.func @_mlp_ln_trans_kernel(%arg0: i32, %arg1: memref<16x128xf32, #tpu.memory_space<vmem>>, %arg2: memref<1x128xf32, #tpu.memory_space<vmem>>, %arg3: memref<1x128xf32, #tpu.memory_space<vmem>>, %arg4: memref<128x256xbf16, #tpu.memory_space<vmem>>, %arg5: memref<1x256xf32, #tpu.memory_space<vmem>>, %arg6: memref<1x256xf32, #tpu.memory_space<vmem>>, %arg7: memref<1x256xf32, #tpu.memory_space<vmem>>, %arg8: memref<256x128xbf16, #tpu.memory_space<vmem>>, %arg9: memref<1x128xf32, #tpu.memory_space<vmem>>, %arg10: memref<16x128xf32, #tpu.memory_space<vmem>>) attributes {dimension_semantics = [#tpu.dimension_semantics<parallel>], iteration_bounds = array<i64: 1>, scalar_prefetch = 0 : i64, scratch_operands = 0 : i64, tpu.core_type = #tpu.core_type<tc>, window_params = [{transform_indices = @transform_0, window_bounds = array<i64: 16, 128>}, {pipeline_mode = #tpu.pipeline_mode<synchronous>, transform_indices = @transform_1, window_bounds = array<i64: 1, 128>}, {pipeline_mode = #tpu.pipeline_mode<synchronous>, transform_indices = @transform_2, window_bounds = array<i64: 1, 128>}, {pipeline_mode = #tpu.pipeline_mode<synchronous>, transform_indices = @transform_3, window_bounds = array<i64: 128, 256>}, {pipeline_mode = #tpu.pipeline_mode<synchronous>, transform_indices = @transform_4, window_bounds = array<i64: 1, 256>}, {pipeline_mode = #tpu.pipeline_mode<synchronous>, transform_indices = @transform_5, window_bounds = array<i64: 1, 256>}, {pipeline_mode = #tpu.pipeline_mode<synchronous>, transform_indices = @transform_6, window_bounds = array<i64: 1, 256>}, {pipeline_mode = #tpu.pipeline_mode<synchronous>, transform_indices = @transform_7, window_bounds = array<i64: 256, 128>}, {pipeline_mode = #tpu.pipeline_mode<synchronous>, transform_indices = @transform_8, window_bounds = array<i64: 1, 128>}, {transform_indices = @transform_9, window_bounds = array<i64: 16, 128>}]} {
    %c0 = arith.constant 0 : index
    %c0_0 = arith.constant 0 : index
    %0 = vector.load %arg1[%c0, %c0_0] : memref<16x128xf32, #tpu.memory_space<vmem>>, vector<16x128xf32>
    %cst = arith.constant dense<0.000000e+00> : vector<16xf32>
    %1 = vector.multi_reduction <add>, %0, %cst [1] : vector<16x128xf32> to vector<16xf32>
    %2 = vector.shape_cast %1 : vector<16xf32> to vector<16x1xf32>
    %cst_1 = arith.constant 1.280000e+02 : f32
    %3 = vector.broadcast %cst_1 : f32 to vector<16x1xf32>
    %4 = arith.divf %2, %3 : vector<16x1xf32>
    %5 = vector.broadcast %4 : vector<16x1xf32> to vector<16x128xf32>
    %6 = arith.subf %0, %5 : vector<16x128xf32>
    %7 = arith.mulf %6, %6 : vector<16x128xf32>
    %cst_2 = arith.constant dense<0.000000e+00> : vector<16xf32>
    %8 = vector.multi_reduction <add>, %7, %cst_2 [1] : vector<16x128xf32> to vector<16xf32>
    %9 = vector.shape_cast %8 : vector<16xf32> to vector<16x1xf32>
    %cst_3 = arith.constant 1.280000e+02 : f32
    %10 = vector.broadcast %cst_3 : f32 to vector<16x1xf32>
    %11 = arith.divf %9, %10 : vector<16x1xf32>
    %12 = vector.broadcast %4 : vector<16x1xf32> to vector<16x128xf32>
    %13 = arith.subf %0, %12 : vector<16x128xf32>
    %cst_4 = arith.constant 9.99999996E-13 : f32
    %14 = vector.broadcast %cst_4 : f32 to vector<16x1xf32>
    %15 = arith.addf %11, %14 : vector<16x1xf32>
    %16 = math.rsqrt %15 : vector<16x1xf32>
    %17 = vector.broadcast %16 : vector<16x1xf32> to vector<16x128xf32>
    %18 = arith.mulf %13, %17 : vector<16x128xf32>
    %c0_5 = arith.constant 0 : index
    %c0_6 = arith.constant 0 : index
    %19 = vector.load %arg2[%c0_5, %c0_6] : memref<1x128xf32, #tpu.memory_space<vmem>>, vector<1x128xf32>
    %20 = vector.broadcast %19 : vector<1x128xf32> to vector<16x128xf32>
    %21 = arith.mulf %18, %20 : vector<16x128xf32>
    %c0_7 = arith.constant 0 : index
    %c0_8 = arith.constant 0 : index
    %22 = vector.load %arg3[%c0_7, %c0_8] : memref<1x128xf32, #tpu.memory_space<vmem>>, vector<1x128xf32>
    %23 = vector.broadcast %22 : vector<1x128xf32> to vector<16x128xf32>
    %24 = arith.addf %21, %23 : vector<16x128xf32>
    %25 = arith.truncf %24 : vector<16x128xf32> to vector<16x128xbf16>
    %c0_9 = arith.constant 0 : index
    %c0_10 = arith.constant 0 : index
    %26 = vector.load %arg4[%c0_9, %c0_10] : memref<128x256xbf16, #tpu.memory_space<vmem>>, vector<128x256xbf16>
    %cst_11 = arith.constant dense<0.000000e+00> : vector<16x256xf32>
    %27 = tpu.matmul %25, %26, %cst_11 {dimension_numbers = #tpu.dot_dimension_numbers<[1], [0], [0], [1], [0, 0, 1, 1], [], []>} : vector<16x128xbf16>, vector<128x256xbf16>, vector<16x256xf32> -> vector<16x256xf32>
    %c0_12 = arith.constant 0 : index
    %c0_13 = arith.constant 0 : index
    %28 = vector.load %arg5[%c0_12, %c0_13] : memref<1x256xf32, #tpu.memory_space<vmem>>, vector<1x256xf32>
    %29 = vector.broadcast %28 : vector<1x256xf32> to vector<16x256xf32>
    %30 = arith.addf %27, %29 : vector<16x256xf32>
    %cst_14 = arith.constant 5.000000e-01 : f32
    %31 = vector.broadcast %cst_14 : f32 to vector<16x256xf32>
    %32 = arith.mulf %31, %30 : vector<16x256xf32>
    %cst_15 = arith.constant 0.707106769 : f32
    %33 = vector.broadcast %cst_15 : f32 to vector<16x256xf32>
    %34 = arith.mulf %30, %33 : vector<16x256xf32>
    %35 = math.erf %34 : vector<16x256xf32>
    %cst_16 = arith.constant 1.000000e+00 : f32
    %36 = vector.broadcast %cst_16 : f32 to vector<16x256xf32>
    %37 = arith.addf %36, %35 : vector<16x256xf32>
    %38 = arith.mulf %32, %37 : vector<16x256xf32>
    %cst_17 = arith.constant dense<0.000000e+00> : vector<16xf32>
    %39 = vector.multi_reduction <add>, %38, %cst_17 [1] : vector<16x256xf32> to vector<16xf32>
    %40 = vector.shape_cast %39 : vector<16xf32> to vector<16x1xf32>
    %cst_18 = arith.constant 2.560000e+02 : f32
    %41 = vector.broadcast %cst_18 : f32 to vector<16x1xf32>
    %42 = arith.divf %40, %41 : vector<16x1xf32>
    %43 = vector.broadcast %42 : vector<16x1xf32> to vector<16x256xf32>
    %44 = arith.subf %38, %43 : vector<16x256xf32>
    %45 = arith.mulf %44, %44 : vector<16x256xf32>
    %cst_19 = arith.constant dense<0.000000e+00> : vector<16xf32>
    %46 = vector.multi_reduction <add>, %45, %cst_19 [1] : vector<16x256xf32> to vector<16xf32>
    %47 = vector.shape_cast %46 : vector<16xf32> to vector<16x1xf32>
    %cst_20 = arith.constant 2.560000e+02 : f32
    %48 = vector.broadcast %cst_20 : f32 to vector<16x1xf32>
    %49 = arith.divf %47, %48 : vector<16x1xf32>
    %50 = vector.broadcast %42 : vector<16x1xf32> to vector<16x256xf32>
    %51 = arith.subf %38, %50 : vector<16x256xf32>
    %cst_21 = arith.constant 9.99999996E-13 : f32
    %52 = vector.broadcast %cst_21 : f32 to vector<16x1xf32>
    %53 = arith.addf %49, %52 : vector<16x1xf32>
    %54 = math.rsqrt %53 : vector<16x1xf32>
    %55 = vector.broadcast %54 : vector<16x1xf32> to vector<16x256xf32>
    %56 = arith.mulf %51, %55 : vector<16x256xf32>
    %c0_22 = arith.constant 0 : index
    %c0_23 = arith.constant 0 : index
    %57 = vector.load %arg6[%c0_22, %c0_23] : memref<1x256xf32, #tpu.memory_space<vmem>>, vector<1x256xf32>
    %58 = vector.broadcast %57 : vector<1x256xf32> to vector<16x256xf32>
    %59 = arith.mulf %56, %58 : vector<16x256xf32>
    %c0_24 = arith.constant 0 : index
    %c0_25 = arith.constant 0 : index
    %60 = vector.load %arg7[%c0_24, %c0_25] : memref<1x256xf32, #tpu.memory_space<vmem>>, vector<1x256xf32>
    %61 = vector.broadcast %60 : vector<1x256xf32> to vector<16x256xf32>
    %62 = arith.addf %59, %61 : vector<16x256xf32>
    %63 = arith.truncf %62 : vector<16x256xf32> to vector<16x256xbf16>
    %c0_26 = arith.constant 0 : index
    %c0_27 = arith.constant 0 : index
    %64 = vector.load %arg8[%c0_26, %c0_27] : memref<256x128xbf16, #tpu.memory_space<vmem>>, vector<256x128xbf16>
    %cst_28 = arith.constant dense<0.000000e+00> : vector<16x128xf32>
    %65 = tpu.matmul %63, %64, %cst_28 {dimension_numbers = #tpu.dot_dimension_numbers<[1], [0], [0], [1], [0, 0, 1, 1], [], []>} : vector<16x256xbf16>, vector<256x128xbf16>, vector<16x128xf32> -> vector<16x128xf32>
    %c0_29 = arith.constant 0 : index
    %c0_30 = arith.constant 0 : index
    %66 = vector.load %arg9[%c0_29, %c0_30] : memref<1x128xf32, #tpu.memory_space<vmem>>, vector<1x128xf32>
    %67 = vector.broadcast %66 : vector<1x128xf32> to vector<16x128xf32>
    %68 = arith.addf %65, %67 : vector<16x128xf32>
    %69 = arith.addf %68, %0 : vector<16x128xf32>
    %c0_31 = arith.constant 0 : index
    %c0_32 = arith.constant 0 : index
    %70 = vector.load %arg10[%c0_31, %c0_32] : memref<16x128xf32, #tpu.memory_space<vmem>>, vector<16x128xf32>
    tpu.vector_store %arg10[%c0_31, %c0_32], %69 {strides = array<i32>} : memref<16x128xf32, #tpu.memory_space<vmem>>, vector<16x128xf32>,
    return
  }
  func.func @transform_0(%arg0: i32) -> (i32, i32) {
    %c0_i32 = arith.constant 0 : i32
    %c0_i32_0 = arith.constant 0 : i32
    return %arg0, %c0_i32 : i32, i32
  }
  func.func @transform_1(%arg0: i32) -> (i32, i32) {
    %c0_i32 = arith.constant 0 : i32
    %c0_i32_0 = arith.constant 0 : i32
    %c0_i32_1 = arith.constant 0 : i32
    return %c0_i32, %c0_i32_0 : i32, i32
  }
  func.func @transform_2(%arg0: i32) -> (i32, i32) {
    %c0_i32 = arith.constant 0 : i32
    %c0_i32_0 = arith.constant 0 : i32
    %c0_i32_1 = arith.constant 0 : i32
    return %c0_i32, %c0_i32_0 : i32, i32
  }
  func.func @transform_3(%arg0: i32) -> (i32, i32) {
    %c0_i32 = arith.constant 0 : i32
    %c0_i32_0 = arith.constant 0 : i32
    %c0_i32_1 = arith.constant 0 : i32
    return %c0_i32, %c0_i32_0 : i32, i32
  }
  func.func @transform_4(%arg0: i32) -> (i32, i32) {
    %c0_i32 = arith.constant 0 : i32
    %c0_i32_0 = arith.constant 0 : i32
    %c0_i32_1 = arith.constant 0 : i32
    return %c0_i32, %c0_i32_0 : i32, i32
  }
  func.func @transform_5(%arg0: i32) -> (i32, i32) {
    %c0_i32 = arith.constant 0 : i32
    %c0_i32_0 = arith.constant 0 : i32
    %c0_i32_1 = arith.constant 0 : i32
    return %c0_i32, %c0_i32_0 : i32, i32
  }
  func.func @transform_6(%arg0: i32) -> (i32, i32) {
    %c0_i32 = arith.constant 0 : i32
    %c0_i32_0 = arith.constant 0 : i32
    %c0_i32_1 = arith.constant 0 : i32
    return %c0_i32, %c0_i32_0 : i32, i32
  }
  func.func @transform_7(%arg0: i32) -> (i32, i32) {
    %c0_i32 = arith.constant 0 : i32
    %c0_i32_0 = arith.constant 0 : i32
    %c0_i32_1 = arith.constant 0 : i32
    return %c0_i32, %c0_i32_0 : i32, i32
  }
  func.func @transform_8(%arg0: i32) -> (i32, i32) {
    %c0_i32 = arith.constant 0 : i32
    %c0_i32_0 = arith.constant 0 : i32
    %c0_i32_1 = arith.constant 0 : i32
    return %c0_i32, %c0_i32_0 : i32, i32
  }
  func.func @transform_9(%arg0: i32) -> (i32, i32) {
    %c0_i32 = arith.constant 0 : i32
    %c0_i32_0 = arith.constant 0 : i32
    return %arg0, %c0_i32 : i32, i32
  }
}

module attributes {stable_mosaic.version = 11 : i64} {
  func.func @_mlp_ln_trans_kernel(%arg0: i32, %arg1: memref<16x128xf32, #tpu.memory_space<vmem>>, %arg2: memref<1x128xf32, #tpu.memory_space<vmem>>, %arg3: memref<1x128xf32, #tpu.memory_space<vmem>>, %arg4: memref<128x256xbf16, #tpu.memory_space<vmem>>, %arg5: memref<1x256xf32, #tpu.memory_space<vmem>>, %arg6: memref<1x256xf32, #tpu.memory_space<vmem>>, %arg7: memref<1x256xf32, #tpu.memory_space<vmem>>, %arg8: memref<256x128xbf16, #tpu.memory_space<vmem>>, %arg9: memref<1x128xf32, #tpu.memory_space<vmem>>, %arg10: memref<16x128xf32, #tpu.memory_space<vmem>>) attributes {dimension_semantics = [#tpu.dimension_semantics<parallel>], iteration_bounds = array<i64: 1>, scalar_prefetch = 0 : i64, scratch_operands = 0 : i64, tpu.core_type = #tpu.core_type<tc>, window_params = [{transform_indices = @transform_0, window_bounds = array<i64: 16, 128>}, {pipeline_mode = #tpu.pipeline_mode<synchronous>, transform_indices = @transform_1, window_bounds = array<i64: 1, 128>}, {pipeline_mode = #tpu.pipeline_mode<synchronous>, transform_indices = @transform_2, window_bounds = array<i64: 1, 128>}, {pipeline_mode = #tpu.pipeline_mode<synchronous>, transform_indices = @transform_3, window_bounds = array<i64: 128, 256>}, {pipeline_mode = #tpu.pipeline_mode<synchronous>, transform_indices = @transform_4, window_bounds = array<i64: 1, 256>}, {pipeline_mode = #tpu.pipeline_mode<synchronous>, transform_indices = @transform_5, window_bounds = array<i64: 1, 256>}, {pipeline_mode = #tpu.pipeline_mode<synchronous>, transform_indices = @transform_6, window_bounds = array<i64: 1, 256>}, {pipeline_mode = #tpu.pipeline_mode<synchronous>, transform_indices = @transform_7, window_bounds = array<i64: 256, 128>}, {pipeline_mode = #tpu.pipeline_mode<synchronous>, transform_indices = @transform_8, window_bounds = array<i64: 1, 128>}, {transform_indices = @transform_9, window_bounds = array<i64: 16, 128>}]} {
    %c0 = arith.constant 0 : index
    %c0_0 = arith.constant 0 : index
    %0 = vector.load %arg1[%c0, %c0_0] : memref<16x128xf32, #tpu.memory_space<vmem>>, vector<16x128xf32>
    %cst = arith.constant dense<0.000000e+00> : vector<16xf32>
    %1 = vector.multi_reduction <add>, %0, %cst [1] : vector<16x128xf32> to vector<16xf32>
    %2 = vector.shape_cast %1 : vector<16xf32> to vector<16x1xf32>
    %cst_1 = arith.constant 1.280000e+02 : f32
    %3 = vector.broadcast %cst_1 : f32 to vector<16x1xf32>
    %4 = arith.divf %2, %3 : vector<16x1xf32>
    %5 = vector.broadcast %4 : vector<16x1xf32> to vector<16x128xf32>
    %6 = arith.subf %0, %5 : vector<16x128xf32>
    %7 = arith.mulf %6, %6 : vector<16x128xf32>
    %cst_2 = arith.constant dense<0.000000e+00> : vector<16xf32>
    %8 = vector.multi_reduction <add>, %7, %cst_2 [1] : vector<16x128xf32> to vector<16xf32>
    %9 = vector.shape_cast %8 : vector<16xf32> to vector<16x1xf32>
    %cst_3 = arith.constant 1.280000e+02 : f32
    %10 = vector.broadcast %cst_3 : f32 to vector<16x1xf32>
    %11 = arith.divf %9, %10 : vector<16x1xf32>
    %12 = vector.broadcast %4 : vector<16x1xf32> to vector<16x128xf32>
    %13 = arith.subf %0, %12 : vector<16x128xf32>
    %cst_4 = arith.constant 9.99999996E-13 : f32
    %14 = vector.broadcast %cst_4 : f32 to vector<16x1xf32>
    %15 = arith.addf %11, %14 : vector<16x1xf32>
    %16 = math.rsqrt %15 : vector<16x1xf32>
    %17 = vector.broadcast %16 : vector<16x1xf32> to vector<16x128xf32>
    %18 = arith.mulf %13, %17 : vector<16x128xf32>
    %c0_5 = arith.constant 0 : index
    %c0_6 = arith.constant 0 : index
    %19 = vector.load %arg2[%c0_5, %c0_6] : memref<1x128xf32, #tpu.memory_space<vmem>>, vector<1x128xf32>
    %20 = vector.broadcast %19 : vector<1x128xf32> to vector<16x128xf32>
    %21 = arith.mulf %18, %20 : vector<16x128xf32>
    %c0_7 = arith.constant 0 : index
    %c0_8 = arith.constant 0 : index
    %22 = vector.load %arg3[%c0_7, %c0_8] : memref<1x128xf32, #tpu.memory_space<vmem>>, vector<1x128xf32>
    %23 = vector.broadcast %22 : vector<1x128xf32> to vector<16x128xf32>
    %24 = arith.addf %21, %23 : vector<16x128xf32>
    %25 = arith.truncf %24 : vector<16x128xf32> to vector<16x128xbf16>
    %c0_9 = arith.constant 0 : index
    %c0_10 = arith.constant 0 : index
    %26 = vector.load %arg4[%c0_9, %c0_10] : memref<128x256xbf16, #tpu.memory_space<vmem>>, vector<128x256xbf16>
    %cst_11 = arith.constant dense<0.000000e+00> : vector<16x256xf32>
    %27 = tpu.matmul %25, %26, %cst_11 {dimension_numbers = #tpu.dot_dimension_numbers<[1], [0], [0], [1], [0, 0, 1, 1], [], []>} : vector<16x128xbf16>, vector<128x256xbf16>, vector<16x256xf32> -> vector<16x256xf32>
    %c0_12 = arith.constant 0 : index
    %c0_13 = arith.constant 0 : index
    %28 = vector.load %arg5[%c0_12, %c0_13] : memref<1x256xf32, #tpu.memory_space<vmem>>, vector<1x256xf32>
    %29 = vector.broadcast %28 : vector<1x256xf32> to vector<16x256xf32>
    %30 = arith.addf %27, %29 : vector<16x256xf32>
    %cst_14 = arith.constant 5.000000e-01 : f32
    %31 = vector.broadcast %cst_14 : f32 to vector<16x256xf32>
    %32 = arith.mulf %31, %30 : vector<16x256xf32>
    %cst_15 = arith.constant 0.707106769 : f32
    %33 = vector.broadcast %cst_15 : f32 to vector<16x256xf32>
    %34 = arith.mulf %30, %33 : vector<16x256xf32>
    %35 = math.erf %34 : vector<16x256xf32>
    %cst_16 = arith.constant 1.000000e+00 : f32
    %36 = vector.broadcast %cst_16 : f32 to vector<16x256xf32>
    %37 = arith.addf %36, %35 : vector<16x256xf32>
    %38 = arith.mulf %32, %37 : vector<16x256xf32>
    %cst_17 = arith.constant dense<0.000000e+00> : vector<16xf32>
    %39 = vector.multi_reduction <add>, %38, %cst_17 [1] : vector<16x256xf32> to vector<16xf32>
    %40 = vector.shape_cast %39 : vector<16xf32> to vector<16x1xf32>
    %cst_18 = arith.constant 2.560000e+02 : f32
    %41 = vector.broadcast %cst_18 : f32 to vector<16x1xf32>
    %42 = arith.divf %40, %41 : vector<16x1xf32>
    %43 = vector.broadcast %42 : vector<16x1xf32> to vector<16x256xf32>
    %44 = arith.subf %38, %43 : vector<16x256xf32>
    %45 = arith.mulf %44, %44 : vector<16x256xf32>
    %cst_19 = arith.constant dense<0.000000e+00> : vector<16xf32>
    %46 = vector.multi_reduction <add>, %45, %cst_19 [1] : vector<16x256xf32> to vector<16xf32>
    %47 = vector.shape_cast %46 : vector<16xf32> to vector<16x1xf32>
    %cst_20 = arith.constant 2.560000e+02 : f32
    %48 = vector.broadcast %cst_20 : f32 to vector<16x1xf32>
    %49 = arith.divf %47, %48 : vector<16x1xf32>
    %50 = vector.broadcast %42 : vector<16x1xf32> to vector<16x256xf32>
    %51 = arith.subf %38, %50 : vector<16x256xf32>
    %cst_21 = arith.constant 9.99999996E-13 : f32
    %52 = vector.broadcast %cst_21 : f32 to vector<16x1xf32>
    %53 = arith.addf %49, %52 : vector<16x1xf32>
    %54 = math.rsqrt %53 : vector<16x1xf32>
    %55 = vector.broadcast %54 : vector<16x1xf32> to vector<16x256xf32>
    %56 = arith.mulf %51, %55 : vector<16x256xf32>
    %c0_22 = arith.constant 0 : index
    %c0_23 = arith.constant 0 : index
    %57 = vector.load %arg6[%c0_22, %c0_23] : memref<1x256xf32, #tpu.memory_space<vmem>>, vector<1x256xf32>
    %58 = vector.broadcast %57 : vector<1x256xf32> to vector<16x256xf32>
    %59 = arith.mulf %56, %58 : vector<16x256xf32>
    %c0_24 = arith.constant 0 : index
    %c0_25 = arith.constant 0 : index
    %60 = vector.load %arg7[%c0_24, %c0_25] : memref<1x256xf32, #tpu.memory_space<vmem>>, vector<1x256xf32>
    %61 = vector.broadcast %60 : vector<1x256xf32> to vector<16x256xf32>
    %62 = arith.addf %59, %61 : vector<16x256xf32>
    %63 = arith.truncf %62 : vector<16x256xf32> to vector<16x256xbf16>
    %c0_26 = arith.constant 0 : index
    %c0_27 = arith.constant 0 : index
    %64 = vector.load %arg8[%c0_26, %c0_27] : memref<256x128xbf16, #tpu.memory_space<vmem>>, vector<256x128xbf16>
    %cst_28 = arith.constant dense<0.000000e+00> : vector<16x128xf32>
    %65 = tpu.matmul %63, %64, %cst_28 {dimension_numbers = #tpu.dot_dimension_numbers<[1], [0], [0], [1], [0, 0, 1, 1], [], []>} : vector<16x256xbf16>, vector<256x128xbf16>, vector<16x128xf32> -> vector<16x128xf32>
    %c0_29 = arith.constant 0 : index
    %c0_30 = arith.constant 0 : index
    %66 = vector.load %arg9[%c0_29, %c0_30] : memref<1x128xf32, #tpu.memory_space<vmem>>, vector<1x128xf32>
    %67 = vector.broadcast %66 : vector<1x128xf32> to vector<16x128xf32>
    %68 = arith.addf %65, %67 : vector<16x128xf32>
    %69 = arith.addf %68, %0 : vector<16x128xf32>
    %c0_31 = arith.constant 0 : index
    %c0_32 = arith.constant 0 : index
    %70 = vector.load %arg10[%c0_31, %c0_32] : memref<16x128xf32, #tpu.memory_space<vmem>>, vector<16x128xf32>
    tpu.vector_store %arg10[%c0_31, %c0_32], %69 {strides = array<i32>} : memref<16x128xf32, #tpu.memory_space<vmem>>, vector<16x128xf32>,
    return
  }
  func.func @transform_0(%arg0: i32) -> (i32, i32) {
    %c0_i32 = arith.constant 0 : i32
    %c0_i32_0 = arith.constant 0 : i32
    return %arg0, %c0_i32 : i32, i32
  }
  func.func @transform_1(%arg0: i32) -> (i32, i32) {
    %c0_i32 = arith.constant 0 : i32
    %c0_i32_0 = arith.constant 0 : i32
    %c0_i32_1 = arith.constant 0 : i32
    return %c0_i32, %c0_i32_0 : i32, i32
  }
  func.func @transform_2(%arg0: i32) -> (i32, i32) {
    %c0_i32 = arith.constant 0 : i32
    %c0_i32_0 = arith.constant 0 : i32
    %c0_i32_1 = arith.constant 0 : i32
    return %c0_i32, %c0_i32_0 : i32, i32
  }
  func.func @transform_3(%arg0: i32) -> (i32, i32) {
    %c0_i32 = arith.constant 0 : i32
    %c0_i32_0 = arith.constant 0 : i32
    %c0_i32_1 = arith.constant 0 : i32
    return %c0_i32, %c0_i32_0 : i32, i32
  }
  func.func @transform_4(%arg0: i32) -> (i32, i32) {
    %c0_i32 = arith.constant 0 : i32
    %c0_i32_0 = arith.constant 0 : i32
    %c0_i32_1 = arith.constant 0 : i32
    return %c0_i32, %c0_i32_0 : i32, i32
  }
  func.func @transform_5(%arg0: i32) -> (i32, i32) {
    %c0_i32 = arith.constant 0 : i32
    %c0_i32_0 = arith.constant 0 : i32
    %c0_i32_1 = arith.constant 0 : i32
    return %c0_i32, %c0_i32_0 : i32, i32
  }
  func.func @transform_6(%arg0: i32) -> (i32, i32) {
    %c0_i32 = arith.constant 0 : i32
    %c0_i32_0 = arith.constant 0 : i32
    %c0_i32_1 = arith.constant 0 : i32
    return %c0_i32, %c0_i32_0 : i32, i32
  }
  func.func @transform_7(%arg0: i32) -> (i32, i32) {
    %c0_i32 = arith.constant 0 : i32
    %c0_i32_0 = arith.constant 0 : i32
    %c0_i32_1 = arith.constant 0 : i32
    return %c0_i32, %c0_i32_0 : i32, i32
  }
  func.func @transform_8(%arg0: i32) -> (i32, i32) {
    %c0_i32 = arith.constant 0 : i32
    %c0_i32_0 = arith.constant 0 : i32
    %c0_i32_1 = arith.constant 0 : i32
    return %c0_i32, %c0_i32_0 : i32, i32
  }
  func.func @transform_9(%arg0: i32) -> (i32, i32) {
    %c0_i32 = arith.constant 0 : i32
    %c0_i32_0 = arith.constant 0 : i32
    return %arg0, %c0_i32 : i32, i32
  }
}

</mosaic_0001>

<bundles_post_ra>
// kernel: tpu_custom_call.1
= control target key start
LH: loop header
LB: loop body
LE: loop exit
PB: predicated region body
PF: predicated region fallthrough
CT: control target
= control target key end

     0   :  { %14 = vsyncpa [#allocation3], 0  ;;  %s987_s0 = inlined_call_operand.hbm [shape: f32[16,128], index: 0, kind: input, shape index: {}]   ;;  %s988_s1 = inlined_call_operand.vmem [shape: f32[1,128], index: 1, kind: input, shape index: {}]   ;;  %s989_s2 = inlined_call_operand.hbm [shape: f32[1,128], index: 2, kind: input, shape index: {}]   ;;  %s990_s3 = inlined_call_operand.hbm [shape: bf16[128,256], index: 3, kind: input, shape index: {}]   ;;  %s991_s4 = inlined_call_operand.vmem [shape: f32[1,256], index: 4, kind: input, shape index: {}]   ;;  %s992_s5 = inlined_call_operand.vmem [shape: f32[1,256], index: 5, kind: input, shape index: {}]   ;;  %s993_s6 = inlined_call_operand.vmem [shape: f32[1,256], index: 6, kind: input, shape index: {}]   ;;  %s994_s7 = inlined_call_operand.hbm [shape: bf16[256,128], index: 7, kind: input, shape index: {}]   ;;  %s995_s8 = inlined_call_operand.vmem [shape: f32[1,128], index: 8, kind: input, shape index: {}]   ;;  %s996_s9 = inlined_call_operand.hbm [shape: f32[16,128], index: 9, kind: output, shape index: {}]  }
   0x1   :  { %15 = vsyncpa [#allocation6], 0 }
   0x2   :  { %16 = vsyncpa [#allocation9], 0 }
   0x3   :  { %17 = vsyncpa [#allocation4], 0  ;;  %s809_s30 = smov [#allocation5]   ;;  %s810_s11 = smov [#allocation2]  }
   0x4   :  { %s38_s10 = sshll.u32 %s809_s30, 4  ;;  %s23_s12 = sshll.u32 %s810_s11, 4  ;;  %s39_s10 = int_to_ptr.vmem [resolvable:$true] %s38_s10  ;;  %s869_s12 = int_to_ptr.vmem [resolvable:$true] %s23_s12 }
   0x5   :  { %s691_s15 = scalar_lea.hbm %s989_s2, 16 }
   0x6   :  { %p692_p0 = scmp.ne.s32.totalorder %s989_s2, %s691_s15  ;;  %p695_p1 = scmp.lt.u32.totalorder %s691_s15, %s989_s2 }
   0x8   :  { %p697_p2 = pnand %p695_p1, %p692_p0 }
   0xa   :  { %700 = shalt.err (!%p697_p2)
}
   0xb   :  { %s701_s20 = scalar_lea.vmem %s39_s10, 16  ;;  %s705_s21 = scalar_lea.vmem %s39_s10, 32 }
   0xc   :  { %p702_p3 = scmp.ne.s32.totalorder %s39_s10, %s701_s20  ;;  %p706_p4 = scmp.lt.s32.totalorder %s39_s10, %s39_s10 }
   0xd   :  { %p707_p5 = scmp.lt.s32.totalorder %s705_s21, %s701_s20 }
   0xf   :  { %p708_p6 = por %p707_p5, %p706_p4 }
  0x11   :  { %p709_p7 = pnand %p708_p6, %p702_p3 }
  0x13   :  { %712 = shalt.err (!%p709_p7)
}
  0x14   :  { %41 = dma.hbm_to_vmem [thread:$0]  %s989_s2, 16, %s39_s10, [#allocation6]  }
  0x15   :  { %s713_s26 = scalar_lea.hbm %s987_s0, 256 }
  0x16   :  { %p714_p8 = scmp.ne.s32.totalorder %s987_s0, %s713_s26  ;;  %p717_p9 = scmp.lt.u32.totalorder %s713_s26, %s987_s0 }
  0x18   :  { %p719_p10 = pnand %p717_p9, %p714_p8 }
  0x1a   :  { %722 = shalt.err (!%p719_p10)
}
  0x1b   :  { %s723_s11 = scalar_lea.vmem %s869_s12, 256  ;;  %p728_p12 = scmp.lt.s32.totalorder %s869_s12, %s869_s12 }
  0x1c   :  { %p724_p11 = scmp.ne.s32.totalorder %s869_s12, %s723_s11  ;;  %p729_p13 = scmp.lt.s32.totalorder %s723_s11, %s723_s11 }
  0x1e   :  { %p730_p0 = por %p729_p13, %p728_p12 }
  0x20   :  { %p731_p1 = pnand %p730_p0, %p724_p11 }
  0x22   :  { %734 = shalt.err (!%p731_p1)
}
  0x23   :  { %s811_s2 = smov 128   ;;  %s812_s10 = smov 8  }
  0x24   :  { %29 = dma.hbm_to_vmem [thread:$0]  %s987_s0, 256, %s869_s12, [#allocation3], %s811_s2, %s811_s2, %s812_s10  }
  0x25   :  { %s813_s15 = smov [#allocation7]   ;;  %s814_s17 = smov [#allocation8]  }
  0x26   :  { %s47_s16 = sshll.u32 %s813_s15, 4  ;;  %s65_s18 = sshll.u32 %s814_s17, 4  ;;  %s48_s16 = int_to_ptr.vmem [resolvable:$true] %s47_s16  ;;  %s903_s18 = int_to_ptr.vmem [resolvable:$true] %s65_s18 }
  0x27   :  { %s735_s21 = scalar_lea.hbm %s990_s3, 2048 }
  0x28   :  { %p736_p2 = scmp.ne.s32.totalorder %s990_s3, %s735_s21  ;;  %p739_p3 = scmp.lt.u32.totalorder %s735_s21, %s990_s3 }
  0x2a   :  { %p741_p4 = pnand %p739_p3, %p736_p2 }
  0x2c   :  { %744 = shalt.err (!%p741_p4)
}
  0x2d   :  { %s745_s0 = scalar_lea.vmem %s48_s16, 2048  ;;  %p750_p6 = scmp.lt.s32.totalorder %s48_s16, %s48_s16 }
  0x2e   :  { %p746_p5 = scmp.ne.s32.totalorder %s48_s16, %s745_s0  ;;  %p751_p7 = scmp.lt.s32.totalorder %s745_s0, %s745_s0 }
  0x30   :  { %p752_p8 = por %p751_p7, %p750_p6 }
  0x32   :  { %p753_p9 = pnand %p752_p8, %p746_p5 }
  0x34   :  { %756 = shalt.err (!%p753_p9)
}
  0x35   :  { %53 = dma.hbm_to_vmem [thread:$0]  %s990_s3, 2048, %s48_s16, [#allocation6], %s811_s2, %s811_s2, %s812_s10  }
  0x36   :  { %s757_s29 = scalar_lea.hbm %s994_s7, 2048 }
  0x37   :  { %p758_p10 = scmp.ne.s32.totalorder %s994_s7, %s757_s29  ;;  %p761_p11 = scmp.lt.u32.totalorder %s757_s29, %s994_s7 }
  0x39   :  { %p763_p12 = pnand %p761_p11, %p758_p10 }
  0x3b   :  { %766 = shalt.err (!%p763_p12)
}
  0x3c   :  { %s767_s15 = scalar_lea.vmem %s903_s18, 2048  ;;  %p772_p0 = scmp.lt.s32.totalorder %s903_s18, %s903_s18 }
  0x3d   :  { %p768_p13 = scmp.ne.s32.totalorder %s903_s18, %s767_s15  ;;  %p773_p1 = scmp.lt.s32.totalorder %s767_s15, %s767_s15 }
  0x3f   :  { %p774_p2 = por %p773_p1, %p772_p0 }
  0x41   :  { %p775_p3 = pnand %p774_p2, %p768_p13 }
  0x43   :  { %778 = shalt.err (!%p775_p3)
}
  0x44   :  { %s815_s3 = smov 64   ;;  %s816_s16 = smov 4  }
  0x45   :  { %71 = dma.hbm_to_vmem [thread:$0]  %s994_s7, 2048, %s903_s18, [#allocation9], %s815_s3, %s815_s3, %s816_s16  }
  0x46   :  { %801 = dma.done.wait [#allocation3], 256  }
  0x47   :  { %802 = vsyncadd [#allocation3], 4294967040 }
  0x48   :  { %803 = dma.done.wait [#allocation6], 2064  }
  0x49   :  { %804 = vsyncadd [#allocation6], 4294965232 }
  0x4a   :  { %805 = dma.done.wait [#allocation9], 2048  }
  0x4b   :  { %806 = vsyncadd [#allocation9], 4294965248  ;;  %v937_v0 = vld [vmem:[#allocation2] sm:$0xff]  ;;  %v939_v1 = vld [vmem:[#allocation2 + $0x8] sm:$0xff]  ;;  %v817_v21 = vmov 0   ;;  %v149_v44 = vlaneseq  ;;  %s818_s24 = smov [#allocation10]  }
  0x4c   :  { %89 = vadd.xlane.f32.xlu0 %v937_v0  ;;  %v635_v2 = vld [vmem:[#allocation7 + $0x4] ss:$8 sps:$4 sm:$0xff]   ;;  %v637_v3 = vld [vmem:[#allocation7] ss:$8 sps:$4 sm:$0xff]   ;;  %v638_v4 = vld [vmem:[#allocation7 + $0x14] ss:$8 sps:$4 sm:$0xff]   ;;  %271 = vmatprep.mubr.bf16.mxu0 %v817_v21 }
  0x4d   :  { %239 = vmatprep.subr.bf16.mxu0 %v635_v2  ;;  %v640_v13 = vld [vmem:[#allocation7 + $0x10] ss:$8 sps:$4 sm:$0xff]   ;;  %v641_v14 = vld [vmem:[#allocation7 + $0x24] ss:$8 sps:$4 sm:$0xff]   ;;  %v643_v15 = vld [vmem:[#allocation7 + $0x20] ss:$8 sps:$4 sm:$0xff]  }
  0x4e   :  { %240 = vmatpush1.bf16.msra.mxu0 %v637_v3  ;;  %v644_v16 = vld [vmem:[#allocation7 + $0x34] ss:$8 sps:$4 sm:$0xff]   ;;  %v646_v17 = vld [vmem:[#allocation7 + $0x30] ss:$8 sps:$4 sm:$0xff]   ;;  %v647_v18 = vld [vmem:[#allocation7 + $0x44] ss:$8 sps:$4 sm:$0xff]  }
  0x4f   :  { %241 = vmatprep.subr.bf16.mxu0 %v638_v4  ;;  %v649_v19 = vld [vmem:[#allocation7 + $0x40] ss:$8 sps:$4 sm:$0xff]   ;;  %v650_v20 = vld [vmem:[#allocation7 + $0x54] ss:$8 sps:$4 sm:$0xff]   ;;  %v652_v22 = vld [vmem:[#allocation7 + $0x50] ss:$8 sps:$4 sm:$0xff]  }
  0x50   :  { %91 = vadd.xlane.f32.xlu0 %v939_v1  ;;  %v653_v23 = vld [vmem:[#allocation7 + $0x64] ss:$8 sps:$4 sm:$0xff]   ;;  %v655_v24 = vld [vmem:[#allocation7 + $0x60] ss:$8 sps:$4 sm:$0xff]   ;;  %v656_v25 = vld [vmem:[#allocation7 + $0x74] ss:$8 sps:$4 sm:$0xff]  }
  0x51   :  { %v658_v26 = vld [vmem:[#allocation7 + $0x70] ss:$8 sps:$4 sm:$0xff]   ;;  %v568_v35 = vld [vmem:[%s988_s1] ss:$0 sm:$0xff]  ;;  %v569_v39 = vld [vmem:[#allocation5] ss:$0 sm:$0xff] }
  0x52   :  { %242 = vmatpush1.bf16.msra.mxu0 %v640_v13  ;;  %v150_v45 = vshrl.u32 %v149_v44, 7  ;;  %v147_v47 = vld [vmem:[%s991_s4] sm:$0x3]  ;;  %s554_s25 = sshll.u32 %s818_s24, 4  ;;  %s555_s25 = int_to_ptr.vmem [resolvable:$true] %s554_s25 }
  0x53   :  { %243 = vmatprep.subr.bf16.mxu0 %v641_v14  ;;  %v661_v21 = vld [vmem:[#allocation8 + $0x48] sm:$0xff]   ;;  %s779_s0 = scalar_lea.vmem %s555_s25, 256  ;;  %p784_p5 = scmp.lt.s32.totalorder %s555_s25, %s555_s25 }
  0x54   :  { %v948_v46 = vsub.s32 0, %v150_v45  ;;  %v953_v48 = vsub.s32 1, %v150_v45  ;;  %v670_v44 = vld [vmem:[#allocation8 + $0x28] sm:$0xff]   ;;  %v671_v45 = vld [vmem:[#allocation8 + $0x70] sm:$0xff]   ;;  %p780_p4 = scmp.ne.s32.totalorder %s555_s25, %s779_s0  ;;  %p785_p6 = scmp.lt.s32.totalorder %s779_s0, %s779_s0 }
  0x56   :  { %244 = vmatpush1.bf16.msra.mxu0 %v643_v15  ;;  %v152_v49 = vrot.slane %v147_v47, %v948_v46  ;;  %v156_v50 = vrot.slane %v147_v47, %v953_v48  ;;  %v672_v47 = vld [vmem:[#allocation8 + $0x30] sm:$0xff]   ;;  %p786_p7 = por %p785_p6, %p784_p5 }
  0x57   :  { %245 = vmatprep.subr.bf16.mxu0 %v644_v16 }
  0x58   :  { %p787_p8 = pnand %p786_p7, %p780_p4 }
  0x5a   :  { %246 = vmatpush1.bf16.msra.mxu0 %v646_v17 }
  0x5b   :  { %247 = vmatprep.subr.bf16.mxu0 %v647_v18 }
  0x5e   :  { %248 = vmatpush1.bf16.msra.mxu0 %v649_v19  ;;  %v659_v19 = vld [vmem:[#allocation8 + $0x40] sm:$0xff]  }
  0x5f   :  { %249 = vmatprep.subr.bf16.mxu0 %v650_v20  ;;  %v660_v20 = vld [vmem:[#allocation8] sm:$0xff]   ;;  %603 = vmatprep.subr.bf16.mxu1 %v659_v19 }
  0x60   :  { %604 = vmatpush3.bf16.msra.mxu1 %v660_v20 }
  0x61   :  { %605 = vmatprep.subr.bf16.mxu1 %v661_v21 }
  0x62   :  { %250 = vmatpush1.bf16.msra.mxu0 %v652_v22  ;;  %v662_v22 = vld [vmem:[#allocation8 + $0x8] sm:$0xff]  }
  0x63   :  { %251 = vmatprep.subr.bf16.mxu0 %v653_v23 }
  0x64   :  { %606 = vmatpush3.bf16.msra.mxu1 %v662_v22 }
  0x66   :  { %252 = vmatpush1.bf16.msra.mxu0 %v655_v24 }
  0x67   :  { %253 = vmatprep.subr.bf16.mxu0 %v656_v25 }
  0x6a   :  { %254 = vmatpush1.bf16.msra.mxu0 %v658_v26 }
  0xd9   :  { %v90_v5 = vpop.xlane.xlu0 %89 }
  0xda   :  { %v94_v6 = vmul.f32 0.0078125, %v90_v5 }
  0xdc   :  { %v96_v7 = vsub.f32 %v937_v0, %v94_v6 }
  0xdd   :  { %v92_v8 = vpop.xlane.xlu0 %91 }
  0xde   :  { %v95_v9 = vmul.f32 0.0078125, %v92_v8  ;;  %v98_v10 = vmul.f32 %v96_v7, %v96_v7 }
  0xe0   :  { %v97_v11 = vsub.f32 %v939_v1, %v95_v9  ;;  %100 = vadd.xlane.f32.xlu1 %v98_v10 }
  0xe2   :  { %v99_v12 = vmul.f32 %v97_v11, %v97_v11 }
  0xe4   :  { %102 = vadd.xlane.f32.xlu1 %v99_v12 }
 0x16d   :  { %v101_v27 = vpop.xlane.xlu1 %100 }
 0x16e   :  { %v104_v28 = vmul.f32 0.0078125, %v101_v27 }
 0x170   :  { %v106_v29 = vadd.f32 1e-12, %v104_v28 }
 0x171   :  { %v103_v30 = vpop.xlane.xlu1 %102 }
 0x172   :  { %675 = vrsqrt.f32 %v106_v29  ;;  %v105_v31 = vmul.f32 0.0078125, %v103_v30 }
 0x174   :  { %v107_v32 = vadd.f32 1e-12, %v105_v31 }
 0x176   :  { %677 = vrsqrt.f32 %v107_v32 }
 0x17c   :  { %v676_v33 = vpop.eup %675 }
 0x17d   :  { %v110_v34 = vmul.f32 %v676_v33, %v96_v7 }
 0x17f   :  { %v119_v38 = vmul.f32 %v568_v35, %v110_v34 }
 0x180   :  { %v678_v36 = vpop.eup %677 }
 0x181   :  { %v111_v37 = vmul.f32 %v678_v36, %v97_v11  ;;  %v128_v41 = vadd.f32 %v569_v39, %v119_v38  ;;  %v664_v38 = vld [vmem:[#allocation8 + $0x10] sm:$0xff]  }
 0x183   :  { %v120_v40 = vmul.f32 %v568_v35, %v111_v37  ;;  %v663_v37 = vld [vmem:[#allocation8 + $0x50] sm:$0xff]  }
 0x184   :  { %607 = vmatprep.subr.bf16.mxu1 %v663_v37 }
 0x185   :  { %v129_v42 = vadd.f32 %v569_v39, %v120_v40  ;;  %608 = vmatpush3.bf16.msra.mxu1 %v664_v38  ;;  %v665_v39 = vld [vmem:[#allocation8 + $0x58] sm:$0xff]  }
 0x186   :  { %v666_v40 = vld [vmem:[#allocation8 + $0x18] sm:$0xff]   ;;  %609 = vmatprep.subr.bf16.mxu1 %v665_v39 }
 0x187   :  { %v130_v43 = vpack.c.bf16 %v129_v42, %v128_v41  ;;  %v667_v41 = vld [vmem:[#allocation8 + $0x60] sm:$0xff]  }
 0x188   :  { %v668_v42 = vld [vmem:[#allocation8 + $0x20] sm:$0xff]  }
 0x189   :  { %272 = vmatmul.mubr.bf16.vlgmr.msra.gmra.mrb[0].mxu0 %v130_v43  ;;  %610 = vmatpush3.bf16.msra.mxu1 %v666_v40  ;;  %v669_v43 = vld [vmem:[#allocation8 + $0x68] sm:$0xff]  }
 0x18a   :  { %611 = vmatprep.subr.bf16.mxu1 %v667_v41 }
 0x18d   :  { %612 = vmatpush3.bf16.msra.mxu1 %v668_v42 }
 0x18e   :  { %613 = vmatprep.subr.bf16.mxu1 %v669_v43 }
 0x191   :  { %614 = vmatpush3.bf16.msra.mxu1 %v670_v44 }
 0x192   :  { %615 = vmatprep.subr.bf16.mxu1 %v671_v45 }
 0x195   :  { %616 = vmatpush3.bf16.msra.mxu1 %v672_v47 }
 0x25c   :  { %v273_v51 = vpop.f32.mrb[0].mxu0 }
 0x25d   :  { %v274_v52 = vadd.f32 %v273_v51, %v152_v49  ;;  %v275_v53 = vpop.f32.mrb[1].mxu0 }
 0x25e   :  { %v276_v54 = vadd.f32 %v275_v53, %v156_v50  ;;  %v277_v55 = vpop.f32.mrb[2].mxu0 }
 0x25f   :  { %v286_v56 = vmul.f32 0.70710677, %v274_v52  ;;  %v278_v57 = vadd.f32 %v277_v55, %v152_v49  ;;  %v279_v58 = vpop.f32.mrb[3].mxu0  ;;  %v282_v3 = vmul.f32 0.5, %v274_v52  ;;  %v673_v49 = vld [vmem:[#allocation8 + $0x78] sm:$0xff]  }
 0x260   :  { %v287_v59 = vmul.f32 0.70710677, %v276_v54  ;;  %v280_v60 = vadd.f32 %v279_v58, %v156_v50  ;;  %v283_v6 = vmul.f32 0.5, %v276_v54  ;;  %v674_v50 = vld [vmem:[#allocation8 + $0x38] sm:$0xff]   ;;  %617 = vmatprep.subr.bf16.mxu1 %v673_v49 }
 0x261   :  { %679 = verf.f32 %v286_v56  ;;  %v288_v61 = vmul.f32 0.70710677, %v278_v57  ;;  %v284_v9 = vmul.f32 0.5, %v278_v57  ;;  %618 = vmatpush3.bf16.msra.mxu1 %v674_v50  ;;  %v335_v57 = vld [vmem:[%s992_s5] sm:$0x3] }
 0x262   :  { %681 = verf.f32 %v287_v59  ;;  %v289_v62 = vmul.f32 0.70710677, %v280_v60  ;;  %v285_v12 = vmul.f32 0.5, %v280_v60  ;;  %v340_v58 = vrot.slane %v335_v57, %v948_v46  ;;  %v351_v60 = vld [vmem:[%s993_s6] sm:$0x3] }
 0x263   :  { %683 = verf.f32 %v288_v61  ;;  %v344_v59 = vrot.slane %v335_v57, %v953_v48 }
 0x264   :  { %685 = verf.f32 %v289_v62 }
 0x26b   :  { %v680_v63 = vpop.eup %679 }
 0x26c   :  { %v682_v2 = vpop.eup %681  ;;  %v294_v4 = vadd.f32 1.0, %v680_v63 }
 0x26d   :  { %v684_v5 = vpop.eup %683  ;;  %v295_v7 = vadd.f32 1.0, %v682_v2 }
 0x26e   :  { %v686_v8 = vpop.eup %685  ;;  %v298_v10 = vmul.f32 %v294_v4, %v282_v3  ;;  %v296_v11 = vadd.f32 1.0, %v684_v5  ;;  %v356_v3 = vrot.slane %v351_v60, %v948_v46  ;;  %v360_v4 = vrot.slane %v351_v60, %v953_v48  ;;  %v586_v46 = vld [vmem:[%s995_s8] ss:$0 sm:$0xff] }
 0x26f   :  { %v299_v13 = vmul.f32 %v295_v7, %v283_v6  ;;  %v297_v14 = vadd.f32 1.0, %v686_v8 }
 0x270   :  { %v300_v15 = vmul.f32 %v296_v11, %v284_v9 }
 0x271   :  { %v302_v16 = vadd.f32 %v299_v13, %v298_v10  ;;  %v301_v17 = vmul.f32 %v297_v14, %v285_v12 }
 0x273   :  { %303 = vadd.xlane.f32.xlu0 %v302_v16  ;;  %v305_v18 = vadd.f32 %v301_v17, %v300_v15 }
 0x275   :  { %306 = vadd.xlane.f32.xlu1 %v305_v18 }
 0x300   :  { %v304_v23 = vpop.xlane.xlu0 %303 }
 0x301   :  { %v309_v24 = vmul.f32 0.00390625, %v304_v23 }
 0x302   :  { %v307_v25 = vpop.xlane.xlu1 %306 }
 0x303   :  { %v311_v26 = vsub.f32 %v298_v10, %v309_v24  ;;  %v312_v27 = vsub.f32 %v299_v13, %v309_v24  ;;  %v310_v28 = vmul.f32 0.00390625, %v307_v25 }
 0x305   :  { %v313_v29 = vsub.f32 %v300_v15, %v310_v28  ;;  %v314_v30 = vsub.f32 %v301_v17, %v310_v28  ;;  %v315_v31 = vmul.f32 %v311_v26, %v311_v26  ;;  %v316_v32 = vmul.f32 %v312_v27, %v312_v27 }
 0x307   :  { %v319_v33 = vadd.f32 %v316_v32, %v315_v31  ;;  %v317_v34 = vmul.f32 %v313_v29, %v313_v29  ;;  %v318_v35 = vmul.f32 %v314_v30, %v314_v30 }
 0x309   :  { %320 = vadd.xlane.f32.xlu0 %v319_v33  ;;  %v322_v36 = vadd.f32 %v318_v35, %v317_v34 }
 0x30b   :  { %323 = vadd.xlane.f32.xlu1 %v322_v36 }
 0x396   :  { %v321_v51 = vpop.xlane.xlu0 %320 }
 0x397   :  { %v325_v52 = vmul.f32 0.00390625, %v321_v51 }
 0x398   :  { %v324_v53 = vpop.xlane.xlu1 %323 }
 0x399   :  { %v327_v54 = vadd.f32 1e-12, %v325_v52  ;;  %v326_v55 = vmul.f32 0.00390625, %v324_v53 }
 0x39b   :  { %687 = vrsqrt.f32 %v327_v54  ;;  %v328_v56 = vadd.f32 1e-12, %v326_v55 }
 0x39d   :  { %689 = vrsqrt.f32 %v328_v56 }
 0x3a5   :  { %v688_v61 = vpop.eup %687 }
 0x3a6   :  { %v332_v62 = vmul.f32 %v688_v61, %v312_v27  ;;  %v331_v63 = vmul.f32 %v688_v61, %v311_v26 }
 0x3a7   :  { %v690_v2 = vpop.eup %689 }
 0x3a8   :  { %v334_v5 = vmul.f32 %v690_v2, %v314_v30  ;;  %v348_v6 = vmul.f32 %v344_v59, %v332_v62  ;;  %v333_v7 = vmul.f32 %v690_v2, %v313_v29  ;;  %v347_v8 = vmul.f32 %v340_v58, %v331_v63 }
 0x3aa   :  { %v350_v9 = vmul.f32 %v344_v59, %v334_v5  ;;  %v349_v10 = vmul.f32 %v340_v58, %v333_v7  ;;  %v364_v11 = vadd.f32 %v360_v4, %v348_v6  ;;  %v363_v13 = vadd.f32 %v356_v3, %v347_v8 }
 0x3ac   :  { %v366_v12 = vadd.f32 %v360_v4, %v350_v9  ;;  %v365_v14 = vadd.f32 %v356_v3, %v349_v10 }
 0x3ae   :  { %v368_v15 = vpack.c.bf16 %v366_v12, %v364_v11  ;;  %v367_v16 = vpack.c.bf16 %v365_v14, %v363_v13 }
 0x3b0   :  { %536 = vmatprep.mubr.bf16.mxu1 %v368_v15 }
 0x3b1   :  { %537 = vmatmul.mubr.bf16.vlgmr.msra.gmra.mrb[0].mxu1 %v367_v16 }
 0x484   :  { %v619_v17 = vpop.f32.mrb[0].mxu1 }
 0x485   :  { %v620_v48 = vpop.f32.mrb[1].mxu1 }
 0x486   :  { %v621_v18 = vadd.f32 %v620_v48, %v619_v17  ;;  %v622_v19 = vpop.f32.mrb[2].mxu1 }
 0x487   :  { %v623_v20 = vpop.f32.mrb[3].mxu1 }
 0x488   :  { %v539_v21 = vadd.f32 %v621_v18, %v586_v46  ;;  %v624_v22 = vadd.f32 %v623_v20, %v622_v19 }
 0x48a   :  { %v545_v23 = vadd.f32 %v539_v21, %v937_v0  ;;  %v542_v24 = vadd.f32 %v624_v22, %v586_v46 }
 0x48c   :  { %547 = vst [vmem:[#allocation10] sm:$0xff] %v545_v23  ;;  %v546_v25 = vadd.f32 %v542_v24, %v939_v1 }
 0x48e   :  { %548 = vst [vmem:[#allocation10 + $0x8] sm:$0xff] %v546_v25 }
 0x48f   :  { %790 = shalt.err (!%p787_p8)
}
 0x490   :  { %s791_s26 = scalar_lea.hbm %s996_s9, 256 }
 0x491   :  { %p792_p9 = scmp.ne.s32.totalorder %s996_s9, %s791_s26  ;;  %p795_p10 = scmp.lt.u32.totalorder %s791_s26, %s996_s9 }
 0x493   :  { %p797_p11 = pnand %p795_p10, %p792_p9 }
 0x495   :  { %800 = shalt.err (!%p797_p11)
}
 0x496   :  { %560 = dma.vmem_to_hbm [thread:$0]  %s555_s25, 256, %s996_s9, [#allocation4], %s811_s2, %s811_s2, %s812_s10  }
 0x497   :  { %807 = dma.done.wait [#allocation4], 256  }
 0x498   :  { %808 = vsyncadd [#allocation4], 4294967040 }
 0x499   :  { %564 = vsyncpa [#allocation3], 1 }
 0x49a   :  { %565 = vsyncpa [#allocation6], 1 }
 0x49b   :  { %566 = vsyncpa [#allocation9], 1 }
 0x49c   :  { %567 = vsyncpa [#allocation4], 1 }

// kernel: tpu_custom_call.1
= control target key start
LH: loop header
LB: loop body
LE: loop exit
PB: predicated region body
PF: predicated region fallthrough
CT: control target
= control target key end

     0   :  { %14 = vsyncpa [#allocation3], 0  ;;  %s987_s0 = inlined_call_operand.hbm [shape: f32[16,128], index: 0, kind: input, shape index: {}]   ;;  %s988_s1 = inlined_call_operand.vmem [shape: f32[1,128], index: 1, kind: input, shape index: {}]   ;;  %s989_s2 = inlined_call_operand.hbm [shape: f32[1,128], index: 2, kind: input, shape index: {}]   ;;  %s990_s3 = inlined_call_operand.hbm [shape: bf16[128,256], index: 3, kind: input, shape index: {}]   ;;  %s991_s4 = inlined_call_operand.vmem [shape: f32[1,256], index: 4, kind: input, shape index: {}]   ;;  %s992_s5 = inlined_call_operand.vmem [shape: f32[1,256], index: 5, kind: input, shape index: {}]   ;;  %s993_s6 = inlined_call_operand.vmem [shape: f32[1,256], index: 6, kind: input, shape index: {}]   ;;  %s994_s7 = inlined_call_operand.hbm [shape: bf16[256,128], index: 7, kind: input, shape index: {}]   ;;  %s995_s8 = inlined_call_operand.vmem [shape: f32[1,128], index: 8, kind: input, shape index: {}]   ;;  %s996_s9 = inlined_call_operand.hbm [shape: f32[16,128], index: 9, kind: output, shape index: {}]  }
   0x1   :  { %15 = vsyncpa [#allocation6], 0 }
   0x2   :  { %16 = vsyncpa [#allocation9], 0 }
   0x3   :  { %17 = vsyncpa [#allocation4], 0  ;;  %s809_s30 = smov [#allocation5]   ;;  %s810_s11 = smov [#allocation2]  }
   0x4   :  { %s38_s10 = sshll.u32 %s809_s30, 4  ;;  %s23_s12 = sshll.u32 %s810_s11, 4  ;;  %s39_s10 = int_to_ptr.vmem [resolvable:$true] %s38_s10  ;;  %s869_s12 = int_to_ptr.vmem [resolvable:$true] %s23_s12 }
   0x5   :  { %s691_s15 = scalar_lea.hbm %s989_s2, 16 }
   0x6   :  { %p692_p0 = scmp.ne.s32.totalorder %s989_s2, %s691_s15  ;;  %p695_p1 = scmp.lt.u32.totalorder %s691_s15, %s989_s2 }
   0x8   :  { %p697_p2 = pnand %p695_p1, %p692_p0 }
   0xa   :  { %700 = shalt.err (!%p697_p2)
}
   0xb   :  { %s701_s20 = scalar_lea.vmem %s39_s10, 16  ;;  %s705_s21 = scalar_lea.vmem %s39_s10, 32 }
   0xc   :  { %p702_p3 = scmp.ne.s32.totalorder %s39_s10, %s701_s20  ;;  %p706_p4 = scmp.lt.s32.totalorder %s39_s10, %s39_s10 }
   0xd   :  { %p707_p5 = scmp.lt.s32.totalorder %s705_s21, %s701_s20 }
   0xf   :  { %p708_p6 = por %p707_p5, %p706_p4 }
  0x11   :  { %p709_p7 = pnand %p708_p6, %p702_p3 }
  0x13   :  { %712 = shalt.err (!%p709_p7)
}
  0x14   :  { %41 = dma.hbm_to_vmem [thread:$0]  %s989_s2, 16, %s39_s10, [#allocation6]  }
  0x15   :  { %s713_s26 = scalar_lea.hbm %s987_s0, 256 }
  0x16   :  { %p714_p8 = scmp.ne.s32.totalorder %s987_s0, %s713_s26  ;;  %p717_p9 = scmp.lt.u32.totalorder %s713_s26, %s987_s0 }
  0x18   :  { %p719_p10 = pnand %p717_p9, %p714_p8 }
  0x1a   :  { %722 = shalt.err (!%p719_p10)
}
  0x1b   :  { %s723_s11 = scalar_lea.vmem %s869_s12, 256  ;;  %p728_p12 = scmp.lt.s32.totalorder %s869_s12, %s869_s12 }
  0x1c   :  { %p724_p11 = scmp.ne.s32.totalorder %s869_s12, %s723_s11  ;;  %p729_p13 = scmp.lt.s32.totalorder %s723_s11, %s723_s11 }
  0x1e   :  { %p730_p0 = por %p729_p13, %p728_p12 }
  0x20   :  { %p731_p1 = pnand %p730_p0, %p724_p11 }
  0x22   :  { %734 = shalt.err (!%p731_p1)
}
  0x23   :  { %s811_s2 = smov 128   ;;  %s812_s10 = smov 8  }
  0x24   :  { %29 = dma.hbm_to_vmem [thread:$0]  %s987_s0, 256, %s869_s12, [#allocation3], %s811_s2, %s811_s2, %s812_s10  }
  0x25   :  { %s813_s15 = smov [#allocation7]   ;;  %s814_s17 = smov [#allocation8]  }
  0x26   :  { %s47_s16 = sshll.u32 %s813_s15, 4  ;;  %s65_s18 = sshll.u32 %s814_s17, 4  ;;  %s48_s16 = int_to_ptr.vmem [resolvable:$true] %s47_s16  ;;  %s903_s18 = int_to_ptr.vmem [resolvable:$true] %s65_s18 }
  0x27   :  { %s735_s21 = scalar_lea.hbm %s990_s3, 2048 }
  0x28   :  { %p736_p2 = scmp.ne.s32.totalorder %s990_s3, %s735_s21  ;;  %p739_p3 = scmp.lt.u32.totalorder %s735_s21, %s990_s3 }
  0x2a   :  { %p741_p4 = pnand %p739_p3, %p736_p2 }
  0x2c   :  { %744 = shalt.err (!%p741_p4)
}
  0x2d   :  { %s745_s0 = scalar_lea.vmem %s48_s16, 2048  ;;  %p750_p6 = scmp.lt.s32.totalorder %s48_s16, %s48_s16 }
  0x2e   :  { %p746_p5 = scmp.ne.s32.totalorder %s48_s16, %s745_s0  ;;  %p751_p7 = scmp.lt.s32.totalorder %s745_s0, %s745_s0 }
  0x30   :  { %p752_p8 = por %p751_p7, %p750_p6 }
  0x32   :  { %p753_p9 = pnand %p752_p8, %p746_p5 }
  0x34   :  { %756 = shalt.err (!%p753_p9)
}
  0x35   :  { %53 = dma.hbm_to_vmem [thread:$0]  %s990_s3, 2048, %s48_s16, [#allocation6], %s811_s2, %s811_s2, %s812_s10  }
  0x36   :  { %s757_s29 = scalar_lea.hbm %s994_s7, 2048 }
  0x37   :  { %p758_p10 = scmp.ne.s32.totalorder %s994_s7, %s757_s29  ;;  %p761_p11 = scmp.lt.u32.totalorder %s757_s29, %s994_s7 }
  0x39   :  { %p763_p12 = pnand %p761_p11, %p758_p10 }
  0x3b   :  { %766 = shalt.err (!%p763_p12)
}
  0x3c   :  { %s767_s15 = scalar_lea.vmem %s903_s18, 2048  ;;  %p772_p0 = scmp.lt.s32.totalorder %s903_s18, %s903_s18 }
  0x3d   :  { %p768_p13 = scmp.ne.s32.totalorder %s903_s18, %s767_s15  ;;  %p773_p1 = scmp.lt.s32.totalorder %s767_s15, %s767_s15 }
  0x3f   :  { %p774_p2 = por %p773_p1, %p772_p0 }
  0x41   :  { %p775_p3 = pnand %p774_p2, %p768_p13 }
  0x43   :  { %778 = shalt.err (!%p775_p3)
}
  0x44   :  { %s815_s3 = smov 64   ;;  %s816_s16 = smov 4  }
  0x45   :  { %71 = dma.hbm_to_vmem [thread:$0]  %s994_s7, 2048, %s903_s18, [#allocation9], %s815_s3, %s815_s3, %s816_s16  }
  0x46   :  { %801 = dma.done.wait [#allocation3], 256  }
  0x47   :  { %802 = vsyncadd [#allocation3], 4294967040 }
  0x48   :  { %803 = dma.done.wait [#allocation6], 2064  }
  0x49   :  { %804 = vsyncadd [#allocation6], 4294965232 }
  0x4a   :  { %805 = dma.done.wait [#allocation9], 2048  }
  0x4b   :  { %806 = vsyncadd [#allocation9], 4294965248  ;;  %v937_v0 = vld [vmem:[#allocation2] sm:$0xff]  ;;  %v939_v1 = vld [vmem:[#allocation2 + $0x8] sm:$0xff]  ;;  %v817_v21 = vmov 0   ;;  %v149_v44 = vlaneseq  ;;  %s818_s24 = smov [#allocation10]  }
  0x4c   :  { %89 = vadd.xlane.f32.xlu0 %v937_v0  ;;  %v635_v2 = vld [vmem:[#allocation7 + $0x4] ss:$8 sps:$4 sm:$0xff]   ;;  %v637_v3 = vld [vmem:[#allocation7] ss:$8 sps:$4 sm:$0xff]   ;;  %v638_v4 = vld [vmem:[#allocation7 + $0x14] ss:$8 sps:$4 sm:$0xff]   ;;  %271 = vmatprep.mubr.bf16.mxu0 %v817_v21 }
  0x4d   :  { %239 = vmatprep.subr.bf16.mxu0 %v635_v2  ;;  %v640_v13 = vld [vmem:[#allocation7 + $0x10] ss:$8 sps:$4 sm:$0xff]   ;;  %v641_v14 = vld [vmem:[#allocation7 + $0x24] ss:$8 sps:$4 sm:$0xff]   ;;  %v643_v15 = vld [vmem:[#allocation7 + $0x20] ss:$8 sps:$4 sm:$0xff]  }
  0x4e   :  { %240 = vmatpush1.bf16.msra.mxu0 %v637_v3  ;;  %v644_v16 = vld [vmem:[#allocation7 + $0x34] ss:$8 sps:$4 sm:$0xff]   ;;  %v646_v17 = vld [vmem:[#allocation7 + $0x30] ss:$8 sps:$4 sm:$0xff]   ;;  %v647_v18 = vld [vmem:[#allocation7 + $0x44] ss:$8 sps:$4 sm:$0xff]  }
  0x4f   :  { %241 = vmatprep.subr.bf16.mxu0 %v638_v4  ;;  %v649_v19 = vld [vmem:[#allocation7 + $0x40] ss:$8 sps:$4 sm:$0xff]   ;;  %v650_v20 = vld [vmem:[#allocation7 + $0x54] ss:$8 sps:$4 sm:$0xff]   ;;  %v652_v22 = vld [vmem:[#allocation7 + $0x50] ss:$8 sps:$4 sm:$0xff]  }
  0x50   :  { %91 = vadd.xlane.f32.xlu0 %v939_v1  ;;  %v653_v23 = vld [vmem:[#allocation7 + $0x64] ss:$8 sps:$4 sm:$0xff]   ;;  %v655_v24 = vld [vmem:[#allocation7 + $0x60] ss:$8 sps:$4 sm:$0xff]   ;;  %v656_v25 = vld [vmem:[#allocation7 + $0x74] ss:$8 sps:$4 sm:$0xff]  }
  0x51   :  { %v658_v26 = vld [vmem:[#allocation7 + $0x70] ss:$8 sps:$4 sm:$0xff]   ;;  %v568_v35 = vld [vmem:[%s988_s1] ss:$0 sm:$0xff]  ;;  %v569_v39 = vld [vmem:[#allocation5] ss:$0 sm:$0xff] }
  0x52   :  { %242 = vmatpush1.bf16.msra.mxu0 %v640_v13  ;;  %v150_v45 = vshrl.u32 %v149_v44, 7  ;;  %v147_v47 = vld [vmem:[%s991_s4] sm:$0x3]  ;;  %s554_s25 = sshll.u32 %s818_s24, 4  ;;  %s555_s25 = int_to_ptr.vmem [resolvable:$true] %s554_s25 }
  0x53   :  { %243 = vmatprep.subr.bf16.mxu0 %v641_v14  ;;  %v661_v21 = vld [vmem:[#allocation8 + $0x48] sm:$0xff]   ;;  %s779_s0 = scalar_lea.vmem %s555_s25, 256  ;;  %p784_p5 = scmp.lt.s32.totalorder %s555_s25, %s555_s25 }
  0x54   :  { %v948_v46 = vsub.s32 0, %v150_v45  ;;  %v953_v48 = vsub.s32 1, %v150_v45  ;;  %v670_v44 = vld [vmem:[#allocation8 + $0x28] sm:$0xff]   ;;  %v671_v45 = vld [vmem:[#allocation8 + $0x70] sm:$0xff]   ;;  %p780_p4 = scmp.ne.s32.totalorder %s555_s25, %s779_s0  ;;  %p785_p6 = scmp.lt.s32.totalorder %s779_s0, %s779_s0 }
  0x56   :  { %244 = vmatpush1.bf16.msra.mxu0 %v643_v15  ;;  %v152_v49 = vrot.slane %v147_v47, %v948_v46  ;;  %v156_v50 = vrot.slane %v147_v47, %v953_v48  ;;  %v672_v47 = vld [vmem:[#allocation8 + $0x30] sm:$0xff]   ;;  %p786_p7 = por %p785_p6, %p784_p5 }
  0x57   :  { %245 = vmatprep.subr.bf16.mxu0 %v644_v16 }
  0x58   :  { %p787_p8 = pnand %p786_p7, %p780_p4 }
  0x5a   :  { %246 = vmatpush1.bf16.msra.mxu0 %v646_v17 }
  0x5b   :  { %247 = vmatprep.subr.bf16.mxu0 %v647_v18 }
  0x5e   :  { %248 = vmatpush1.bf16.msra.mxu0 %v649_v19  ;;  %v659_v19 = vld [vmem:[#allocation8 + $0x40] sm:$0xff]  }
  0x5f   :  { %249 = vmatprep.subr.bf16.mxu0 %v650_v20  ;;  %v660_v20 = vld [vmem:[#allocation8] sm:$0xff]   ;;  %603 = vmatprep.subr.bf16.mxu1 %v659_v19 }
  0x60   :  { %604 = vmatpush3.bf16.msra.mxu1 %v660_v20 }
  0x61   :  { %605 = vmatprep.subr.bf16.mxu1 %v661_v21 }
  0x62   :  { %250 = vmatpush1.bf16.msra.mxu0 %v652_v22  ;;  %v662_v22 = vld [vmem:[#allocation8 + $0x8] sm:$0xff]  }
  0x63   :  { %251 = vmatprep.subr.bf16.mxu0 %v653_v23 }
  0x64   :  { %606 = vmatpush3.bf16.msra.mxu1 %v662_v22 }
  0x66   :  { %252 = vmatpush1.bf16.msra.mxu0 %v655_v24 }
  0x67   :  { %253 = vmatprep.subr.bf16.mxu0 %v656_v25 }
  0x6a   :  { %254 = vmatpush1.bf16.msra.mxu0 %v658_v26 }
  0xd9   :  { %v90_v5 = vpop.xlane.xlu0 %89 }
  0xda   :  { %v94_v6 = vmul.f32 0.0078125, %v90_v5 }
  0xdc   :  { %v96_v7 = vsub.f32 %v937_v0, %v94_v6 }
  0xdd   :  { %v92_v8 = vpop.xlane.xlu0 %91 }
  0xde   :  { %v95_v9 = vmul.f32 0.0078125, %v92_v8  ;;  %v98_v10 = vmul.f32 %v96_v7, %v96_v7 }
  0xe0   :  { %v97_v11 = vsub.f32 %v939_v1, %v95_v9  ;;  %100 = vadd.xlane.f32.xlu1 %v98_v10 }
  0xe2   :  { %v99_v12 = vmul.f32 %v97_v11, %v97_v11 }
  0xe4   :  { %102 = vadd.xlane.f32.xlu1 %v99_v12 }
 0x16d   :  { %v101_v27 = vpop.xlane.xlu1 %100 }
 0x16e   :  { %v104_v28 = vmul.f32 0.0078125, %v101_v27 }
 0x170   :  { %v106_v29 = vadd.f32 1e-12, %v104_v28 }
 0x171   :  { %v103_v30 = vpop.xlane.xlu1 %102 }
 0x172   :  { %675 = vrsqrt.f32 %v106_v29  ;;  %v105_v31 = vmul.f32 0.0078125, %v103_v30 }
 0x174   :  { %v107_v32 = vadd.f32 1e-12, %v105_v31 }
 0x176   :  { %677 = vrsqrt.f32 %v107_v32 }
 0x17c   :  { %v676_v33 = vpop.eup %675 }
 0x17d   :  { %v110_v34 = vmul.f32 %v676_v33, %v96_v7 }
 0x17f   :  { %v119_v38 = vmul.f32 %v568_v35, %v110_v34 }
 0x180   :  { %v678_v36 = vpop.eup %677 }
 0x181   :  { %v111_v37 = vmul.f32 %v678_v36, %v97_v11  ;;  %v128_v41 = vadd.f32 %v569_v39, %v119_v38  ;;  %v664_v38 = vld [vmem:[#allocation8 + $0x10] sm:$0xff]  }
 0x183   :  { %v120_v40 = vmul.f32 %v568_v35, %v111_v37  ;;  %v663_v37 = vld [vmem:[#allocation8 + $0x50] sm:$0xff]  }
 0x184   :  { %607 = vmatprep.subr.bf16.mxu1 %v663_v37 }
 0x185   :  { %v129_v42 = vadd.f32 %v569_v39, %v120_v40  ;;  %608 = vmatpush3.bf16.msra.mxu1 %v664_v38  ;;  %v665_v39 = vld [vmem:[#allocation8 + $0x58] sm:$0xff]  }
 0x186   :  { %v666_v40 = vld [vmem:[#allocation8 + $0x18] sm:$0xff]   ;;  %609 = vmatprep.subr.bf16.mxu1 %v665_v39 }
 0x187   :  { %v130_v43 = vpack.c.bf16 %v129_v42, %v128_v41  ;;  %v667_v41 = vld [vmem:[#allocation8 + $0x60] sm:$0xff]  }
 0x188   :  { %v668_v42 = vld [vmem:[#allocation8 + $0x20] sm:$0xff]  }
 0x189   :  { %272 = vmatmul.mubr.bf16.vlgmr.msra.gmra.mrb[0].mxu0 %v130_v43  ;;  %610 = vmatpush3.bf16.msra.mxu1 %v666_v40  ;;  %v669_v43 = vld [vmem:[#allocation8 + $0x68] sm:$0xff]  }
 0x18a   :  { %611 = vmatprep.subr.bf16.mxu1 %v667_v41 }
 0x18d   :  { %612 = vmatpush3.bf16.msra.mxu1 %v668_v42 }
 0x18e   :  { %613 = vmatprep.subr.bf16.mxu1 %v669_v43 }
 0x191   :  { %614 = vmatpush3.bf16.msra.mxu1 %v670_v44 }
 0x192   :  { %615 = vmatprep.subr.bf16.mxu1 %v671_v45 }
 0x195   :  { %616 = vmatpush3.bf16.msra.mxu1 %v672_v47 }
 0x25c   :  { %v273_v51 = vpop.f32.mrb[0].mxu0 }
 0x25d   :  { %v274_v52 = vadd.f32 %v273_v51, %v152_v49  ;;  %v275_v53 = vpop.f32.mrb[1].mxu0 }
 0x25e   :  { %v276_v54 = vadd.f32 %v275_v53, %v156_v50  ;;  %v277_v55 = vpop.f32.mrb[2].mxu0 }
 0x25f   :  { %v286_v56 = vmul.f32 0.70710677, %v274_v52  ;;  %v278_v57 = vadd.f32 %v277_v55, %v152_v49  ;;  %v279_v58 = vpop.f32.mrb[3].mxu0  ;;  %v282_v3 = vmul.f32 0.5, %v274_v52  ;;  %v673_v49 = vld [vmem:[#allocation8 + $0x78] sm:$0xff]  }
 0x260   :  { %v287_v59 = vmul.f32 0.70710677, %v276_v54  ;;  %v280_v60 = vadd.f32 %v279_v58, %v156_v50  ;;  %v283_v6 = vmul.f32 0.5, %v276_v54  ;;  %v674_v50 = vld [vmem:[#allocation8 + $0x38] sm:$0xff]   ;;  %617 = vmatprep.subr.bf16.mxu1 %v673_v49 }
 0x261   :  { %679 = verf.f32 %v286_v56  ;;  %v288_v61 = vmul.f32 0.70710677, %v278_v57  ;;  %v284_v9 = vmul.f32 0.5, %v278_v57  ;;  %618 = vmatpush3.bf16.msra.mxu1 %v674_v50  ;;  %v335_v57 = vld [vmem:[%s992_s5] sm:$0x3] }
 0x262   :  { %681 = verf.f32 %v287_v59  ;;  %v289_v62 = vmul.f32 0.70710677, %v280_v60  ;;  %v285_v12 = vmul.f32 0.5, %v280_v60  ;;  %v340_v58 = vrot.slane %v335_v57, %v948_v46  ;;  %v351_v60 = vld [vmem:[%s993_s6] sm:$0x3] }
 0x263   :  { %683 = verf.f32 %v288_v61  ;;  %v344_v59 = vrot.slane %v335_v57, %v953_v48 }
 0x264   :  { %685 = verf.f32 %v289_v62 }
 0x26b   :  { %v680_v63 = vpop.eup %679 }
 0x26c   :  { %v682_v2 = vpop.eup %681  ;;  %v294_v4 = vadd.f32 1.0, %v680_v63 }
 0x26d   :  { %v684_v5 = vpop.eup %683  ;;  %v295_v7 = vadd.f32 1.0, %v682_v2 }
 0x26e   :  { %v686_v8 = vpop.eup %685  ;;  %v298_v10 = vmul.f32 %v294_v4, %v282_v3  ;;  %v296_v11 = vadd.f32 1.0, %v684_v5  ;;  %v356_v3 = vrot.slane %v351_v60, %v948_v46  ;;  %v360_v4 = vrot.slane %v351_v60, %v953_v48  ;;  %v586_v46 = vld [vmem:[%s995_s8] ss:$0 sm:$0xff] }
 0x26f   :  { %v299_v13 = vmul.f32 %v295_v7, %v283_v6  ;;  %v297_v14 = vadd.f32 1.0, %v686_v8 }
 0x270   :  { %v300_v15 = vmul.f32 %v296_v11, %v284_v9 }
 0x271   :  { %v302_v16 = vadd.f32 %v299_v13, %v298_v10  ;;  %v301_v17 = vmul.f32 %v297_v14, %v285_v12 }
 0x273   :  { %303 = vadd.xlane.f32.xlu0 %v302_v16  ;;  %v305_v18 = vadd.f32 %v301_v17, %v300_v15 }
 0x275   :  { %306 = vadd.xlane.f32.xlu1 %v305_v18 }
 0x300   :  { %v304_v23 = vpop.xlane.xlu0 %303 }
 0x301   :  { %v309_v24 = vmul.f32 0.00390625, %v304_v23 }
 0x302   :  { %v307_v25 = vpop.xlane.xlu1 %306 }
 0x303   :  { %v311_v26 = vsub.f32 %v298_v10, %v309_v24  ;;  %v312_v27 = vsub.f32 %v299_v13, %v309_v24  ;;  %v310_v28 = vmul.f32 0.00390625, %v307_v25 }
 0x305   :  { %v313_v29 = vsub.f32 %v300_v15, %v310_v28  ;;  %v314_v30 = vsub.f32 %v301_v17, %v310_v28  ;;  %v315_v31 = vmul.f32 %v311_v26, %v311_v26  ;;  %v316_v32 = vmul.f32 %v312_v27, %v312_v27 }
 0x307   :  { %v319_v33 = vadd.f32 %v316_v32, %v315_v31  ;;  %v317_v34 = vmul.f32 %v313_v29, %v313_v29  ;;  %v318_v35 = vmul.f32 %v314_v30, %v314_v30 }
 0x309   :  { %320 = vadd.xlane.f32.xlu0 %v319_v33  ;;  %v322_v36 = vadd.f32 %v318_v35, %v317_v34 }
 0x30b   :  { %323 = vadd.xlane.f32.xlu1 %v322_v36 }
 0x396   :  { %v321_v51 = vpop.xlane.xlu0 %320 }
 0x397   :  { %v325_v52 = vmul.f32 0.00390625, %v321_v51 }
 0x398   :  { %v324_v53 = vpop.xlane.xlu1 %323 }
 0x399   :  { %v327_v54 = vadd.f32 1e-12, %v325_v52  ;;  %v326_v55 = vmul.f32 0.00390625, %v324_v53 }
 0x39b   :  { %687 = vrsqrt.f32 %v327_v54  ;;  %v328_v56 = vadd.f32 1e-12, %v326_v55 }
 0x39d   :  { %689 = vrsqrt.f32 %v328_v56 }
 0x3a5   :  { %v688_v61 = vpop.eup %687 }
 0x3a6   :  { %v332_v62 = vmul.f32 %v688_v61, %v312_v27  ;;  %v331_v63 = vmul.f32 %v688_v61, %v311_v26 }
 0x3a7   :  { %v690_v2 = vpop.eup %689 }
 0x3a8   :  { %v334_v5 = vmul.f32 %v690_v2, %v314_v30  ;;  %v348_v6 = vmul.f32 %v344_v59, %v332_v62  ;;  %v333_v7 = vmul.f32 %v690_v2, %v313_v29  ;;  %v347_v8 = vmul.f32 %v340_v58, %v331_v63 }
 0x3aa   :  { %v350_v9 = vmul.f32 %v344_v59, %v334_v5  ;;  %v349_v10 = vmul.f32 %v340_v58, %v333_v7  ;;  %v364_v11 = vadd.f32 %v360_v4, %v348_v6  ;;  %v363_v13 = vadd.f32 %v356_v3, %v347_v8 }
 0x3ac   :  { %v366_v12 = vadd.f32 %v360_v4, %v350_v9  ;;  %v365_v14 = vadd.f32 %v356_v3, %v349_v10 }
 0x3ae   :  { %v368_v15 = vpack.c.bf16 %v366_v12, %v364_v11  ;;  %v367_v16 = vpack.c.bf16 %v365_v14, %v363_v13 }
 0x3b0   :  { %536 = vmatprep.mubr.bf16.mxu1 %v368_v15 }
 0x3b1   :  { %537 = vmatmul.mubr.bf16.vlgmr.msra.gmra.mrb[0].mxu1 %v367_v16 }
 0x484   :  { %v619_v17 = vpop.f32.mrb[0].mxu1 }
 0x485   :  { %v620_v48 = vpop.f32.mrb[1].mxu1 }
 0x486   :  { %v621_v18 = vadd.f32 %v620_v48, %v619_v17  ;;  %v622_v19 = vpop.f32.mrb[2].mxu1 }
 0x487   :  { %v623_v20 = vpop.f32.mrb[3].mxu1 }
 0x488   :  { %v539_v21 = vadd.f32 %v621_v18, %v586_v46  ;;  %v624_v22 = vadd.f32 %v623_v20, %v622_v19 }
 0x48a   :  { %v545_v23 = vadd.f32 %v539_v21, %v937_v0  ;;  %v542_v24 = vadd.f32 %v624_v22, %v586_v46 }
 0x48c   :  { %547 = vst [vmem:[#allocation10] sm:$0xff] %v545_v23  ;;  %v546_v25 = vadd.f32 %v542_v24, %v939_v1 }
 0x48e   :  { %548 = vst [vmem:[#allocation10 + $0x8] sm:$0xff] %v546_v25 }
 0x48f   :  { %790 = shalt.err (!%p787_p8)
}
 0x490   :  { %s791_s26 = scalar_lea.hbm %s996_s9, 256 }
 0x491   :  { %p792_p9 = scmp.ne.s32.totalorder %s996_s9, %s791_s26  ;;  %p795_p10 = scmp.lt.u32.totalorder %s791_s26, %s996_s9 }
 0x493   :  { %p797_p11 = pnand %p795_p10, %p792_p9 }
 0x495   :  { %800 = shalt.err (!%p797_p11)
}
 0x496   :  { %560 = dma.vmem_to_hbm [thread:$0]  %s555_s25, 256, %s996_s9, [#allocation4], %s811_s2, %s811_s2, %s812_s10  }
 0x497   :  { %807 = dma.done.wait [#allocation4], 256  }
 0x498   :  { %808 = vsyncadd [#allocation4], 4294967040 }
 0x499   :  { %564 = vsyncpa [#allocation3], 1 }
 0x49a   :  { %565 = vsyncpa [#allocation6], 1 }
 0x49b   :  { %566 = vsyncpa [#allocation9], 1 }
 0x49c   :  { %567 = vsyncpa [#allocation4], 1 }

</bundles_post_ra>
